<compile_context>
chip_gen: v6e
topology: v6e:2x2x1
jax: 0.10.0
libtpu: 0.0.40
codegen_flags: <defaults>
</compile_context>

<pallas_src>
import numpy as np
import jax
import jax.numpy as jnp
from jax.experimental import pallas as pl
from jax.experimental.pallas import tpu as pltpu  # noqa: F401  (TPU backend import)


def _label_embed_kernel(x_ref, w_ref, b_ref, o_ref):
    # x_ref: (B, Din)   w_ref: (Din, Dout)   b_ref: (1, Dout)   o_ref: (B, Dout)
    x = x_ref[...]
    # SiLU: x * sigmoid(x); logistic lowers to the EUP (separate bundle slot).
    xs = x * jax.lax.logistic(x)
    y = jnp.dot(xs, w_ref[...], preferred_element_type=jnp.float32) + b_ref[...]
    o_ref[...] = y.astype(o_ref.dtype)


def label_embed(x, w_t, b):
    """x: (B, label_dim) f32. w_t: (label_dim, out_dim). b: (1, out_dim).
    Returns (B, out_dim, 1, 1) — matches `rearrange(x, 'b c -> b c 1 1')`."""
    B, Din = x.shape
    Dout = w_t.shape[1]

    # Lane-density guard: keep the output store 128-lane dense for any out_dim.
    Dout_pad = ((Dout + 127) // 128) * 128
    if Dout_pad != Dout:
        w_t = jnp.pad(w_t, ((0, 0), (0, Dout_pad - Dout)))
        b = jnp.pad(b, ((0, 0), (0, Dout_pad - Dout)))

    cost = pl.CostEstimate(
        flops=2 * B * Din * Dout_pad,
        transcendentals=B * Din,
        bytes_accessed=(B * Din + Din * Dout_pad + Dout_pad + B * Dout_pad) * 4,
    )

    out = pl.pallas_call(
        _label_embed_kernel,
        out_shape=jax.ShapeDtypeStruct((B, Dout_pad), x.dtype),
        cost_estimate=cost,
    )(x, w_t, b)

    if Dout_pad != Dout:
        out = out[:, :Dout]
    return out.reshape(B, Dout, 1, 1)


def init_params(key, label_dim, out_dim):
    """PyTorch Linear convention: y = x @ W^T + b with W of shape (out, in).
    The weight is stored already transposed to (in, out) for the kernel."""
    kw, kb = jax.random.split(key)
    bound = 1.0 / np.sqrt(label_dim)
    w = jax.random.uniform(kw, (out_dim, label_dim), jnp.float32, -bound, bound)
    b = jax.random.uniform(kb, (1, out_dim), jnp.float32, -bound, bound)
    return w.T.astype(jnp.float32), b.astype(jnp.float32)


def reference(x, w_t, b):
    """Pure-JAX reference mirroring the PyTorch forward pass."""
    xs = x * jax.nn.sigmoid(x)                          # nn.SiLU()
    y = xs @ w_t + b                                    # nn.Linear
    return y.reshape(x.shape[0], w_t.shape[1], 1, 1)    # rearrange 'b c -> b c 1 1'


if __name__ == "__main__":
    B, LABEL_DIM, OUT_DIM = 2, 16, 128
    key = jax.random.PRNGKey(0)
    kx, kp = jax.random.split(key)
    x = jax.random.normal(kx, (B, LABEL_DIM), dtype=jnp.float32)
    w_t, b = init_params(kp, LABEL_DIM, OUT_DIM)

    out = jax.block_until_ready(label_embed(x, w_t, b))
    ref = jax.block_until_ready(reference(x, w_t, b))

    assert out.shape == (B, OUT_DIM, 1, 1)
    np.testing.assert_allclose(np.asarray(out), np.asarray(ref), rtol=1e-4, atol=1e-4)

    print("KERNEL_OK")
</pallas_src>

<mosaic_0001>
module attributes {stable_mosaic.version = 11 : i64} {
  func.func @_label_embed_kernel(%arg0: memref<2x16xf32, #tpu.memory_space<vmem>>, %arg1: memref<16x128xf32, #tpu.memory_space<vmem>>, %arg2: memref<1x128xf32, #tpu.memory_space<vmem>>, %arg3: memref<2x128xf32, #tpu.memory_space<vmem>>) attributes {dimension_semantics = [], scalar_prefetch = 0 : i64, scratch_operands = 0 : i64, tpu.core_type = #tpu.core_type<tc>} {
    %c0 = arith.constant 0 : index
    %c0_0 = arith.constant 0 : index
    %0 = vector.load %arg0[%c0, %c0_0] : memref<2x16xf32, #tpu.memory_space<vmem>>, vector<2x16xf32>
    %1 = arith.negf %0 : vector<2x16xf32>
    %2 = math.exp %1 : vector<2x16xf32>
    %cst = arith.constant 1.000000e+00 : f32
    %3 = vector.broadcast %cst : f32 to vector<2x16xf32>
    %4 = arith.addf %3, %2 : vector<2x16xf32>
    %5 = arith.divf %3, %4 : vector<2x16xf32>
    %6 = arith.mulf %0, %5 : vector<2x16xf32>
    %c0_1 = arith.constant 0 : index
    %c0_2 = arith.constant 0 : index
    %7 = vector.load %arg1[%c0_1, %c0_2] : memref<16x128xf32, #tpu.memory_space<vmem>>, vector<16x128xf32>
    %cst_3 = arith.constant dense<0.000000e+00> : vector<2x128xf32>
    %8 = tpu.matmul %6, %7, %cst_3 {dimension_numbers = #tpu.dot_dimension_numbers<[1], [0], [0], [1], [0, 0, 1, 1], [], []>} : vector<2x16xf32>, vector<16x128xf32>, vector<2x128xf32> -> vector<2x128xf32>
    %c0_4 = arith.constant 0 : index
    %c0_5 = arith.constant 0 : index
    %9 = vector.load %arg2[%c0_4, %c0_5] : memref<1x128xf32, #tpu.memory_space<vmem>>, vector<1x128xf32>
    %10 = vector.broadcast %9 : vector<1x128xf32> to vector<2x128xf32>
    %11 = arith.addf %8, %10 : vector<2x128xf32>
    %c0_6 = arith.constant 0 : index
    %c0_7 = arith.constant 0 : index
    %12 = vector.load %arg3[%c0_6, %c0_7] : memref<2x128xf32, #tpu.memory_space<vmem>>, vector<2x128xf32>
    tpu.vector_store %arg3[%c0_6, %c0_7], %11 {strides = array<i32>} : memref<2x128xf32, #tpu.memory_space<vmem>>, vector<2x128xf32>,
    return
  }
}

</mosaic_0001>

<bundles_post_ra>
// kernel: tpu_custom_call.1
= control target key start
LH: loop header
LB: loop body
LE: loop exit
PB: predicated region body
PF: predicated region fallthrough
CT: control target
= control target key end

     0   :  { %8 = vsyncpa [#allocation3], 0  ;;  %s278_s0 = inlined_call_operand.hbm [shape: f32[2,16], index: 0, kind: input, shape index: {}]   ;;  %s279_s1 = inlined_call_operand.hbm [shape: f32[16,128], index: 1, kind: input, shape index: {}]   ;;  %s280_s2 = inlined_call_operand.vmem [shape: f32[1,128], index: 2, kind: input, shape index: {}]   ;;  %s281_s3 = inlined_call_operand.hbm [shape: f32[2,128], index: 3, kind: output, shape index: {}]  }
   0x1   :  { %9 = vsyncpa [#allocation6], 0 }
   0x2   :  { %10 = vsyncpa [#allocation4], 0  ;;  %s239_s12 = smov [#allocation2]   ;;  %s240_s14 = smov [#allocation5]  }
   0x3   :  { %s17_s13 = sshll.u32 %s239_s12, 4  ;;  %s26_s15 = sshll.u32 %s240_s14, 4  ;;  %s18_s13 = int_to_ptr.vmem [resolvable:$true] %s17_s13  ;;  %s27_s15 = int_to_ptr.vmem [resolvable:$true] %s26_s15 }
   0x4   :  { %s181_s16 = scalar_lea.vmem %s18_s13, 32  ;;  %p186_p1 = scmp.lt.s32.totalorder %s18_s13, %s18_s13 }
   0x5   :  { %p182_p0 = scmp.ne.s32.totalorder %s18_s13, %s181_s16  ;;  %p187_p2 = scmp.lt.s32.totalorder %s181_s16, %s181_s16 }
   0x7   :  { %p188_p3 = por %p187_p2, %p186_p1 }
   0x9   :  { %p189_p4 = pnand %p188_p3, %p182_p0 }
   0xb   :  { %192 = shalt.err (!%p189_p4)
}
   0xc   :  { %20 = dma.hbm_to_vmem [thread:$0]  %s278_s0, 32, %s18_s13, [#allocation3]  }
   0xd   :  { %s201_s19 = scalar_lea.vmem %s27_s15, 256  ;;  %p206_p6 = scmp.lt.s32.totalorder %s27_s15, %s27_s15 }
   0xe   :  { %p202_p5 = scmp.ne.s32.totalorder %s27_s15, %s201_s19  ;;  %p207_p7 = scmp.lt.s32.totalorder %s201_s19, %s201_s19 }
  0x10   :  { %p208_p8 = por %p207_p7, %p206_p6 }
  0x12   :  { %p209_p9 = pnand %p208_p8, %p202_p5 }
  0x14   :  { %212 = shalt.err (!%p209_p9)
}
  0x15   :  { %s241_s20 = smov 128   ;;  %s242_s21 = smov 8  }
  0x16   :  { %32 = dma.hbm_to_vmem [thread:$0]  %s279_s1, 256, %s27_s15, [#allocation6], %s241_s20, %s241_s20, %s242_s21  }
  0x17   :  { %233 = dma.done.wait [#allocation3], 32  }
  0x18   :  { %234 = vsyncadd [#allocation3], 4294967264 }
  0x19   :  { %235 = dma.done.wait [#allocation6], 256  }
  0x1a   :  { %236 = vsyncadd [#allocation6], 4294967040  ;;  %v243_v0 = vmov 0.0   ;;  %vm244_vm0 = vmmov 0   ;;  %v50_v1 = vld [vmem:[#allocation5 + $0x8] sm:$0xff]  ;;  %v49_v2 = vld [vmem:[#allocation5] sm:$0xff] }
  0x1b   :  { %155 = vmatprep.subr.mxu0 %v243_v0  ;;  %159 = vmatprep.mubr.msk.f32.mxu0 %vm244_vm0, %v243_v0  ;;  %v41_v3 = vld [vmem:[#allocation2] sm:$0x3]  ;;  %vm58_vm1 = vcmask 130048   ;;  %s245_s24 = smov [#allocation7]  }
  0x1c   :  { %156 = vmatpush3.msra.mxu0 %v50_v1  ;;  %v149_v4 = vmul.f32 -1.442695, %v41_v3  ;;  %v150_v9 = vld [vmem:[%s280_s2] ss:$0 sm:$0xff]  ;;  %s139_s25 = sshll.u32 %s245_s24, 4  ;;  %s140_s25 = int_to_ptr.vmem [resolvable:$true] %s139_s25 }
  0x1d   :  { %157 = vmatprep.subr.mxu0 %v243_v0  ;;  %s213_s26 = scalar_lea.vmem %s140_s25, 32  ;;  %p218_p11 = scmp.lt.s32.totalorder %s140_s25, %s140_s25 }
  0x1e   :  { %158 = vmatpush3.msra.mxu0 %v49_v2  ;;  %169 = vpow2.f32 %v149_v4  ;;  %p214_p10 = scmp.ne.s32.totalorder %s140_s25, %s213_s26  ;;  %p219_p12 = scmp.lt.s32.totalorder %s213_s26, %s213_s26 }
  0x20   :  { %p220_p13 = por %p219_p12, %p218_p11 }
  0x22   :  { %p221_p0 = pnand %p220_p13, %p214_p10 }
  0x2b   :  { %v170_v5 = vpop.eup %169 }
  0x2c   :  { %v45_v6 = vadd.f32 1.0, %v170_v5 }
  0x2e   :  { %171 = vrcp.f32 %v45_v6 }
  0x3b   :  { %v172_v7 = vpop.eup %171 }
  0x3c   :  { %v48_v8 = vmul.f32 %v172_v7, %v41_v3 }
  0x3e   :  { %160 = vmatmul.mubr.msk.f32.vlgmr.msra.gmra.mxu0 %vm58_vm1, %v48_v8 }
  0xfe   :  { %v128_v10 = vpop.f32.mrf.mxu0 }
  0xff   :  { %v129_v11 = vadd.f32 %v150_v9, %v128_v10 }
 0x100   :  { %v161_v12 = vpop.f32.mrf.mxu0 }
 0x101   :  { %132 = vst [vmem:[#allocation7] sm:$0x3] %v129_v11 }
 0x102   :  { %224 = shalt.err (!%p221_p0)
}
 0x103   :  { %142 = dma.vmem_to_hbm [thread:$0]  %s140_s25, 32, %s281_s3, [#allocation4]  }
 0x104   :  { %237 = dma.done.wait [#allocation4], 32  }
 0x105   :  { %238 = vsyncadd [#allocation4], 4294967264 }
 0x106   :  { %146 = vsyncpa [#allocation3], 1 }
 0x107   :  { %147 = vsyncpa [#allocation6], 1 }
 0x108   :  { %148 = vsyncpa [#allocation4], 1 }

</bundles_post_ra>
